<compile_context>
chip_gen: v6e
topology: v6e:2x2x1
jax: 0.10.0
libtpu: 0.0.40
codegen_flags: <defaults>
</compile_context>

<pallas_src>
import functools

import jax
import jax.numpy as jnp
from jax import lax
from jax.experimental import pallas as pl
from jax.experimental.pallas import tpu as pltpu


def _twocon_kernel(x_ref, pmask_ref, nmask_ref, m1_ref, b1_ref, m2_ref,
                   b2_ref, o_ref):
    """Fused conv3x3+relu -> conv3x3+relu on a folded (M, W*C) row slab.

    x_ref    : (M, W*Cin)         M = (batch-per-step) * H lane-packed rows
    pmask_ref: (M, 1)             0/1: row has a valid row above (same image)
    nmask_ref: (M, 1)             0/1: row has a valid row below (same image)
    m1_ref   : (3*W*Cin,  W*Cout) banded conv1 weights, [above|center|below] on K
    b1_ref   : (1, W*Cout)        bias tiled over W
    m2_ref   : (3*W*Cout, W*Cout) banded conv2 weights
    b2_ref   : (1, W*Cout)
    o_ref    : (M, W*Cout)        lane-dense output slab
    """
    M = x_ref.shape[0]
    pmask = pmask_ref[...]          # (M, 1)
    nmask = nmask_ref[...]          # (M, 1)

    def conv3x3_relu(a, m_ref, b_ref):
        # dy = -1 / +1 rows via XLU roll; image-boundary (and fold-boundary)
        # rows are zeroed by the 0/1 masks.  dx taps + dx zero padding live
        # inside the banded weight matrix, so one MXU dot does the whole conv.
        above = pltpu.roll(a, shift=1, axis=0) * pmask       # a[h-1]
        below = pltpu.roll(a, shift=M - 1, axis=0) * nmask   # a[h+1]
        lhs = jnp.concatenate([above, a, below], axis=1)     # (M, 3K)
        acc = jnp.dot(lhs, m_ref[...], preferred_element_type=jnp.float32)
        return jnp.maximum(acc + b_ref[...], 0.0)

    y1 = conv3x3_relu(x_ref[...], m1_ref, b1_ref)            # (M, W*Cout) f32
    y2 = conv3x3_relu(y1, m2_ref, b2_ref)                    # (M, W*Cout) f32
    o_ref[...] = y2.astype(o_ref.dtype)                      # full-lane store


def _banded_weights(w_hwio, W):
    """Fold the dx taps + channel contraction + column zero-padding of a 3x3
    conv into a single (3*W*Cin, W*Cout) banded matrix.  Row blocks are the
    three dy taps (above / center / below), matching the K-concatenated LHS.

    M[dy*W*Cin + w_in*Cin + ci, w_out*Cout + co] = w[dy, w_in - w_out + 1, ci, co]
    when |w_in - w_out| <= 1, else 0.
    """
    kh, kw, cin, cout = w_hwio.shape
    wi = jnp.arange(W)
    dx = wi[:, None] - wi[None, :] + 1                       # (W_in, W_out)
    valid = (dx >= 0) & (dx <= kw - 1)
    dxc = jnp.clip(dx, 0, kw - 1)
    m = w_hwio[:, dxc]                                       # (kh, W_in, W_out, cin, cout)
    m = jnp.where(valid[None, :, :, None, None], m, 0.0)
    m = jnp.transpose(m, (0, 1, 3, 2, 4))                    # (kh, W_in, cin, W_out, cout)
    return m.reshape(kh * W * cin, W * cout)
    # TODO(synk): for large W, W-tile the band (block-tridiagonal) instead of
    # keeping the full (3*W*Cin, W*Cout) matrix -- it is only ~3/W dense.


def prepare_twocon_params(w1, b1, w2, b2, W):
    """Hoisted one-time prep: banded matmul weights + lane-packed biases."""
    cout = w1.shape[-1]
    m1 = _banded_weights(w1, W)                   # (3*W*Cin,  W*Cout)
    m2 = _banded_weights(w2, W)                   # (3*W*Cout, W*Cout)
    b1r = jnp.tile(b1, W).reshape(1, W * cout)
    b2r = jnp.tile(b2, W).reshape(1, W * cout)
    return m1, b1r, m2, b2r


def _two_con_packed(x_nchw, m1, b1r, m2, b2r, *, num_steps):
    """Forward pass of TwoCon given pre-packed params.
    x_nchw: (N, Cin, H, W) f32 -> (N, Cout, H, W)."""
    N, Cin, H, W = x_nchw.shape
    Cout = b1r.shape[-1] // W
    assert N % num_steps == 0
    NB = N // num_steps
    M_blk = NB * H

    # NCHW -> NHWC -> folded (N*H, W*Cin) lane-packed row slab.
    # TODO(synk): keep activations in this layout across layers so the
    # NCHW<->NHWC transposes are amortized instead of paid every call.
    x = jnp.transpose(x_nchw, (0, 2, 3, 1)).reshape(N * H, W * Cin)

    # 0/1 row masks (block-invariant: each block starts at an image boundary).
    # These are input-independent constants, so XLA folds them at compile time.
    ridx = jnp.arange(M_blk) % H
    pmask = (ridx != 0).astype(x.dtype).reshape(M_blk, 1)
    nmask = (ridx != H - 1).astype(x.dtype).reshape(M_blk, 1)

    flops = (2 * N * H * (3 * W * Cin) * (W * Cout)
             + 2 * N * H * (3 * W * Cout) * (W * Cout))
    bytes_accessed = 4 * (N * H * W * Cin + N * H * W * Cout
                          + m1.size + m2.size + b1r.size + b2r.size
                          + 2 * M_blk)

    out = pl.pallas_call(
        _twocon_kernel,
        out_shape=jax.ShapeDtypeStruct((N * H, W * Cout), x.dtype),
        grid=(num_steps,),
        in_specs=[
            pl.BlockSpec((M_blk, W * Cin), lambda i: (i, 0)),
            pl.BlockSpec((M_blk, 1), lambda i: (0, 0)),
            pl.BlockSpec((M_blk, 1), lambda i: (0, 0)),
            # Grid-invariant weights/biases (tiny here; for much larger W,
            # single-buffer them and W-tile the band to stay inside VMEM).
            pl.BlockSpec((3 * W * Cin, W * Cout), lambda i: (0, 0)),
            pl.BlockSpec((1, W * Cout), lambda i: (0, 0)),
            pl.BlockSpec((3 * W * Cout, W * Cout), lambda i: (0, 0)),
            pl.BlockSpec((1, W * Cout), lambda i: (0, 0)),
        ],
        out_specs=pl.BlockSpec((M_blk, W * Cout), lambda i: (i, 0)),
        compiler_params=pltpu.CompilerParams(
            dimension_semantics=("parallel",)),   # batch chunks are independent
        cost_estimate=pl.CostEstimate(flops=flops, transcendentals=0,
                                      bytes_accessed=bytes_accessed),
    )(x, pmask, nmask, m1, b1r, m2, b2r)

    # (N*H, W*Cout) -> NCHW
    out = out.reshape(N, H, W, Cout)
    return jnp.transpose(out, (0, 3, 1, 2))


two_con = jax.jit(_two_con_packed, static_argnames=("num_steps",))


def _default_num_steps(n_batch):
    """2 parallel grid steps on 2-TensorCore chips (v7x) when the batch splits
    evenly; otherwise a single fully-folded step (v5e/v6e have 1 TC, so extra
    grid steps are pure per-step overhead at these shapes)."""
    try:
        kind = jax.devices()[0].device_kind.lower()
    except Exception:
        kind = ""
    if "7" in kind and n_batch >= 2 and n_batch % 2 == 0:
        return 2
    return 1


def _reference(x_nchw, w1, b1, w2, b2):
    """Pure-JAX reference using lax.conv (same semantics as PyTorch Conv2d pad=1)."""
    x = jnp.transpose(x_nchw, (0, 2, 3, 1))
    dn = ('NHWC', 'HWIO', 'NHWC')
    y = lax.conv_general_dilated(x, w1, (1, 1), 'SAME', dimension_numbers=dn) + b1
    y = jnp.maximum(y, 0.0)
    y = lax.conv_general_dilated(y, w2, (1, 1), 'SAME', dimension_numbers=dn) + b2
    y = jnp.maximum(y, 0.0)
    return jnp.transpose(y, (0, 3, 1, 2))


if __name__ == "__main__":
    # Small shapes consistent with the module: batch=2, in_channels=4,
    # out_channels=8, spatial 16x16  (W*Cout = 128 -> lane-dense output).
    N, Cin, Cout, H, W = 2, 4, 8, 16, 16

    key = jax.random.PRNGKey(0)
    kx, k1, kb1, k2, kb2 = jax.random.split(key, 5)

    x = jax.random.normal(kx, (N, Cin, H, W), jnp.float32)          # NCHW like PyTorch
    # Deterministic synthetic weights (HWIO layout), roughly PyTorch-init scale.
    w1 = jax.random.normal(k1, (3, 3, Cin, Cout), jnp.float32) * 0.1
    b1 = jax.random.normal(kb1, (Cout,), jnp.float32) * 0.1
    w2 = jax.random.normal(k2, (3, 3, Cout, Cout), jnp.float32) * 0.1
    b2 = jax.random.normal(kb2, (Cout,), jnp.float32) * 0.1

    # Hoisted one-time param prep (per review feedback).
    params = prepare_twocon_params(w1, b1, w2, b2, W)
    params = jax.tree_util.tree_map(jax.block_until_ready, params)

    num_steps = _default_num_steps(N)
    out = two_con(x, *params, num_steps=num_steps)
    out = jax.block_until_ready(out)

    ref = _reference(x, w1, b1, w2, b2)
    assert out.shape == (N, Cout, H, W)
    assert jnp.allclose(out, ref, atol=1e-4, rtol=1e-4), "mismatch vs reference"

    print("KERNEL_OK")
</pallas_src>

<mosaic_0001>
module attributes {stable_mosaic.version = 11 : i64} {
  func.func @_twocon_kernel(%arg0: i32, %arg1: memref<32x64xf32, #tpu.memory_space<vmem>>, %arg2: memref<32x1xf32, #tpu.memory_space<vmem>>, %arg3: memref<32x1xf32, #tpu.memory_space<vmem>>, %arg4: memref<192x128xf32, #tpu.memory_space<vmem>>, %arg5: memref<1x128xf32, #tpu.memory_space<vmem>>, %arg6: memref<384x128xf32, #tpu.memory_space<vmem>>, %arg7: memref<1x128xf32, #tpu.memory_space<vmem>>, %arg8: memref<32x128xf32, #tpu.memory_space<vmem>>) attributes {dimension_semantics = [#tpu.dimension_semantics<parallel>], iteration_bounds = array<i64: 1>, scalar_prefetch = 0 : i64, scratch_operands = 0 : i64, tpu.core_type = #tpu.core_type<tc>, window_params = [{transform_indices = @transform_0, window_bounds = array<i64: 32, 64>}, {pipeline_mode = #tpu.pipeline_mode<synchronous>, transform_indices = @transform_1, window_bounds = array<i64: 32, 1>}, {pipeline_mode = #tpu.pipeline_mode<synchronous>, transform_indices = @transform_2, window_bounds = array<i64: 32, 1>}, {pipeline_mode = #tpu.pipeline_mode<synchronous>, transform_indices = @transform_3, window_bounds = array<i64: 192, 128>}, {pipeline_mode = #tpu.pipeline_mode<synchronous>, transform_indices = @transform_4, window_bounds = array<i64: 1, 128>}, {pipeline_mode = #tpu.pipeline_mode<synchronous>, transform_indices = @transform_5, window_bounds = array<i64: 384, 128>}, {pipeline_mode = #tpu.pipeline_mode<synchronous>, transform_indices = @transform_6, window_bounds = array<i64: 1, 128>}, {transform_indices = @transform_7, window_bounds = array<i64: 32, 128>}]} {
    %c0 = arith.constant 0 : index
    %c0_0 = arith.constant 0 : index
    %0 = vector.load %arg2[%c0, %c0_0] : memref<32x1xf32, #tpu.memory_space<vmem>>, vector<32x1xf32>
    %c0_1 = arith.constant 0 : index
    %c0_2 = arith.constant 0 : index
    %1 = vector.load %arg3[%c0_1, %c0_2] : memref<32x1xf32, #tpu.memory_space<vmem>>, vector<32x1xf32>
    %c0_3 = arith.constant 0 : index
    %c0_4 = arith.constant 0 : index
    %2 = vector.load %arg1[%c0_3, %c0_4] : memref<32x64xf32, #tpu.memory_space<vmem>>, vector<32x64xf32>
    %c1_i32 = arith.constant 1 : i32
    %3 = tpu.dynamic_rotate %2 by %c1_i32 dim 0 : vector<32x64xf32>, i32 -> vector<32x64xf32>
    %4 = vector.broadcast %0 : vector<32x1xf32> to vector<32x64xf32>
    %5 = arith.mulf %3, %4 : vector<32x64xf32>
    %c31_i32 = arith.constant 31 : i32
    %6 = tpu.dynamic_rotate %2 by %c31_i32 dim 0 : vector<32x64xf32>, i32 -> vector<32x64xf32>
    %7 = vector.broadcast %1 : vector<32x1xf32> to vector<32x64xf32>
    %8 = arith.mulf %6, %7 : vector<32x64xf32>
    %9 = tpu.concatenate %5, %2, %8 in 1 : vector<32x64xf32>, vector<32x64xf32>, vector<32x64xf32> -> vector<32x192xf32>
    %c0_5 = arith.constant 0 : index
    %c0_6 = arith.constant 0 : index
    %10 = vector.load %arg4[%c0_5, %c0_6] : memref<192x128xf32, #tpu.memory_space<vmem>>, vector<192x128xf32>
    %cst = arith.constant dense<0.000000e+00> : vector<32x128xf32>
    %11 = tpu.matmul %9, %10, %cst {dimension_numbers = #tpu.dot_dimension_numbers<[1], [0], [0], [1], [0, 0, 1, 1], [], []>} : vector<32x192xf32>, vector<192x128xf32>, vector<32x128xf32> -> vector<32x128xf32>
    %c0_7 = arith.constant 0 : index
    %c0_8 = arith.constant 0 : index
    %12 = vector.load %arg5[%c0_7, %c0_8] : memref<1x128xf32, #tpu.memory_space<vmem>>, vector<1x128xf32>
    %13 = vector.broadcast %12 : vector<1x128xf32> to vector<32x128xf32>
    %14 = arith.addf %11, %13 : vector<32x128xf32>
    %cst_9 = arith.constant 0.000000e+00 : f32
    %15 = vector.broadcast %cst_9 : f32 to vector<32x128xf32>
    %16 = arith.maximumf %14, %15 : vector<32x128xf32>
    %c1_i32_10 = arith.constant 1 : i32
    %17 = tpu.dynamic_rotate %16 by %c1_i32_10 dim 0 : vector<32x128xf32>, i32 -> vector<32x128xf32>
    %18 = vector.broadcast %0 : vector<32x1xf32> to vector<32x128xf32>
    %19 = arith.mulf %17, %18 : vector<32x128xf32>
    %c31_i32_11 = arith.constant 31 : i32
    %20 = tpu.dynamic_rotate %16 by %c31_i32_11 dim 0 : vector<32x128xf32>, i32 -> vector<32x128xf32>
    %21 = vector.broadcast %1 : vector<32x1xf32> to vector<32x128xf32>
    %22 = arith.mulf %20, %21 : vector<32x128xf32>
    %23 = tpu.concatenate %19, %16, %22 in 1 : vector<32x128xf32>, vector<32x128xf32>, vector<32x128xf32> -> vector<32x384xf32>
    %c0_12 = arith.constant 0 : index
    %c0_13 = arith.constant 0 : index
    %24 = vector.load %arg6[%c0_12, %c0_13] : memref<384x128xf32, #tpu.memory_space<vmem>>, vector<384x128xf32>
    %cst_14 = arith.constant dense<0.000000e+00> : vector<32x128xf32>
    %25 = tpu.matmul %23, %24, %cst_14 {dimension_numbers = #tpu.dot_dimension_numbers<[1], [0], [0], [1], [0, 0, 1, 1], [], []>} : vector<32x384xf32>, vector<384x128xf32>, vector<32x128xf32> -> vector<32x128xf32>
    %c0_15 = arith.constant 0 : index
    %c0_16 = arith.constant 0 : index
    %26 = vector.load %arg7[%c0_15, %c0_16] : memref<1x128xf32, #tpu.memory_space<vmem>>, vector<1x128xf32>
    %27 = vector.broadcast %26 : vector<1x128xf32> to vector<32x128xf32>
    %28 = arith.addf %25, %27 : vector<32x128xf32>
    %cst_17 = arith.constant 0.000000e+00 : f32
    %29 = vector.broadcast %cst_17 : f32 to vector<32x128xf32>
    %30 = arith.maximumf %28, %29 : vector<32x128xf32>
    %c0_18 = arith.constant 0 : index
    %c0_19 = arith.constant 0 : index
    %31 = vector.load %arg8[%c0_18, %c0_19] : memref<32x128xf32, #tpu.memory_space<vmem>>, vector<32x128xf32>
    tpu.vector_store %arg8[%c0_18, %c0_19], %30 {strides = array<i32>} : memref<32x128xf32, #tpu.memory_space<vmem>>, vector<32x128xf32>,
    return
  }
  func.func @transform_0(%arg0: i32) -> (i32, i32) {
    %c0_i32 = arith.constant 0 : i32
    %c0_i32_0 = arith.constant 0 : i32
    return %arg0, %c0_i32 : i32, i32
  }
  func.func @transform_1(%arg0: i32) -> (i32, i32) {
    %c0_i32 = arith.constant 0 : i32
    %c0_i32_0 = arith.constant 0 : i32
    %c0_i32_1 = arith.constant 0 : i32
    return %c0_i32, %c0_i32_0 : i32, i32
  }
  func.func @transform_2(%arg0: i32) -> (i32, i32) {
    %c0_i32 = arith.constant 0 : i32
    %c0_i32_0 = arith.constant 0 : i32
    %c0_i32_1 = arith.constant 0 : i32
    return %c0_i32, %c0_i32_0 : i32, i32
  }
  func.func @transform_3(%arg0: i32) -> (i32, i32) {
    %c0_i32 = arith.constant 0 : i32
    %c0_i32_0 = arith.constant 0 : i32
    %c0_i32_1 = arith.constant 0 : i32
    return %c0_i32, %c0_i32_0 : i32, i32
  }
  func.func @transform_4(%arg0: i32) -> (i32, i32) {
    %c0_i32 = arith.constant 0 : i32
    %c0_i32_0 = arith.constant 0 : i32
    %c0_i32_1 = arith.constant 0 : i32
    return %c0_i32, %c0_i32_0 : i32, i32
  }
  func.func @transform_5(%arg0: i32) -> (i32, i32) {
    %c0_i32 = arith.constant 0 : i32
    %c0_i32_0 = arith.constant 0 : i32
    %c0_i32_1 = arith.constant 0 : i32
    return %c0_i32, %c0_i32_0 : i32, i32
  }
  func.func @transform_6(%arg0: i32) -> (i32, i32) {
    %c0_i32 = arith.constant 0 : i32
    %c0_i32_0 = arith.constant 0 : i32
    %c0_i32_1 = arith.constant 0 : i32
    return %c0_i32, %c0_i32_0 : i32, i32
  }
  func.func @transform_7(%arg0: i32) -> (i32, i32) {
    %c0_i32 = arith.constant 0 : i32
    %c0_i32_0 = arith.constant 0 : i32
    return %arg0, %c0_i32 : i32, i32
  }
}

</mosaic_0001>

<bundles_post_ra>
// kernel: _two_con_packed.1
= control target key start
LH: loop header
LB: loop body
LE: loop exit
PB: predicated region body
PF: predicated region fallthrough
CT: control target
= control target key end

     0   :  { %v42_v0 = vlaneseq  ;;  %v638_v1 = vmov 0   ;;  %v639_v9 = vmov 0.0   ;;  %s640_s24 = smov 64   ;;  %vm122_vm2 = vcmask 523264   ;;  %s1095_s1 = inlined_call_operand.vmem [shape: f32[32,1], index: 1, kind: input, shape index: {}]   ;;  %s1096_s2 = inlined_call_operand.vmem [shape: f32[32,1], index: 2, kind: input, shape index: {}]   ;;  %s1097_s0 = inlined_call_operand.vmem [shape: f32[32,64], index: 0, kind: input, shape index: {}]   ;;  %s1098_s3 = inlined_call_operand.vmem [shape: f32[192,128], index: 3, kind: input, shape index: {}]   ;;  %s1099_s5 = inlined_call_operand.vmem [shape: f32[384,128], index: 5, kind: input, shape index: {}]   ;;  %s1100_s4 = inlined_call_operand.vmem [shape: f32[1,128], index: 4, kind: input, shape index: {}]   ;;  %s1101_s6 = inlined_call_operand.vmem [shape: f32[1,128], index: 6, kind: input, shape index: {}]   ;;  %s1102_s7 = inlined_call_operand.vmem [shape: f32[32,128], index: 7, kind: output, shape index: {}]  }
   0x1   :  { %632 = vset.pattern.permute.xlu1 %v638_v1  ;;  %631 = vset.pattern.permute.xlu0 %v638_v1  ;;  %v27_v2 = vld [vmem:[%s1095_s1 + $0x8] sm:$0xff]  ;;  %v26_v3 = vld [vmem:[%s1095_s1] sm:$0xff]  ;;  %v36_v11 = vld [vmem:[%s1097_s0 + $0x10] sm:$0xff] }
   0x2   :  { %56 = vperm.xlu1 %632, %v27_v2   ;;  %51 = vperm.xlu0 %631, %v26_v3   ;;  %v34_v4 = vld [vmem:[%s1097_s0] sm:$0xff]  ;;  %v690_v5 = vshrl.u32 %v42_v0, 7  ;;  %v31_v6 = vld [vmem:[%s1096_s2 + $0x8] sm:$0xff]  ;;  %v37_v12 = vld [vmem:[%s1097_s0 + $0x18] sm:$0xff]  ;;  %v40_v15 = vrot.slane %v36_v11, 7  ;;  %v75_v16 = vrot.slane %v36_v11, 1 }
   0x3   :  { %v30_v7 = vld [vmem:[%s1096_s2] sm:$0xff]  ;;  %v35_v8 = vld [vmem:[%s1097_s0 + $0x8] sm:$0xff]  ;;  %170 = vmatprep.subr.mxu0 %v639_v9  ;;  %v38_v10 = vrot.slane %v34_v4, 7  ;;  %v73_v14 = vrot.slane %v34_v4, 1  ;;  %v41_v17 = vrot.slane %v37_v12, 7  ;;  %v76_v18 = vrot.slane %v37_v12, 1 }
   0x4   :  { %vm44_vm0 = vcmp.lt.s32.totalorder %v690_v5, 1  ;;  %v39_v13 = vrot.slane %v35_v8, 7  ;;  %vm77_vm1 = vcmp.lt.s32.totalorder %v690_v5, 7  ;;  %v142_v19 = vld [vmem:[%s1098_s3 + $0x78] sm:$0xff]  ;;  %v633_v20 = vpack.i.bf16 %v35_v8, %v34_v4  ;;  %v141_v21 = vld [vmem:[%s1098_s3 + $0x70] sm:$0xff]  ;;  %v140_v29 = vld [vmem:[%s1098_s3 + $0x68] sm:$0xff] }
   0x5   :  { %v74_v23 = vrot.slane %v35_v8, 1  ;;  %v28_v24 = vld [vmem:[%s1095_s1 + $0x10] sm:$0xff]  ;;  %171 = vmatpush1.msra.mxu0 %v142_v19  ;;  %v725_v25 = vsel %vm44_vm0, %v41_v17, %v38_v10  ;;  %v745_v30 = vsel %vm44_vm0, %v40_v15, %v41_v17  ;;  %v749_v31 = vsel %vm77_vm1, %v75_v16, %v76_v18  ;;  %v29_v32 = vld [vmem:[%s1095_s1 + $0x18] sm:$0xff]  ;;  %v139_v34 = vld [vmem:[%s1098_s3 + $0x60] sm:$0xff] }
   0x6   :  { %89 = vperm.xlu1 %632, %v31_v6   ;;  %84 = vperm.xlu0 %631, %v30_v7   ;;  %v718_v22 = vsel %vm44_vm0, %v38_v10, %v39_v13  ;;  %v729_v26 = vsel %vm44_vm0, %v39_v13, %v40_v15  ;;  %v32_v33 = vld [vmem:[%s1096_s2 + $0x10] sm:$0xff]  ;;  %v764_v35 = vsel %vm77_vm1, %v76_v18, %v73_v14  ;;  %v138_v36 = vld [vmem:[%s1098_s3 + $0x58] sm:$0xff]  ;;  %v136_v39 = vld [vmem:[%s1098_s3 + $0x48] sm:$0xff] }
   0x7   :  { %172 = vmatprep.subr.mxu0 %v639_v9  ;;  %v734_v27 = vsel %vm77_vm1, %v74_v23, %v75_v16  ;;  %v738_v28 = vsel %vm77_vm1, %v73_v14, %v74_v23  ;;  %v33_v37 = vld [vmem:[%s1096_s2 + $0x18] sm:$0xff]  ;;  %v137_v38 = vld [vmem:[%s1098_s3 + $0x50] sm:$0xff]  ;;  %v135_v40 = vld [vmem:[%s1098_s3 + $0x40] sm:$0xff] }
   0x8   :  { %173 = vmatpush1.msra.mxu0 %v141_v21  ;;  %v314_v41 = vld [vmem:[%s1099_s5 + $0xf8] sm:$0xff]  ;;  %v313_v43 = vld [vmem:[%s1099_s5 + $0xf0] sm:$0xff]  ;;  %v312_v46 = vld [vmem:[%s1099_s5 + $0xe8] sm:$0xff] }
   0x9   :  { %174 = vmatprep.subr.mxu0 %v639_v9  ;;  %v298_v42 = vld [vmem:[%s1099_s5 + $0x78] sm:$0xff]  ;;  %526 = vmatprep.subr.mxu1 %v314_v41  ;;  %v297_v45 = vld [vmem:[%s1099_s5 + $0x70] sm:$0xff]  ;;  %v296_v48 = vld [vmem:[%s1099_s5 + $0x68] sm:$0xff] }
   0xa   :  { %61 = vperm.xlu1 %632, %v28_v24   ;;  %634 = vrot.lane.b32.xlu0 %v633_v20, %s640_s24  ;;  %v134_v44 = vld [vmem:[%s1098_s3 + $0x38] sm:$0xff]  ;;  %v133_v47 = vld [vmem:[%s1098_s3 + $0x30] sm:$0xff]  ;;  %v311_v49 = vld [vmem:[%s1099_s5 + $0xe0] sm:$0xff] }
   0xb   :  { %175 = vmatpush1.msra.mxu0 %v140_v29  ;;  %527 = vmatpush3.msra.mxu1 %v298_v42  ;;  %v132_v50 = vld [vmem:[%s1098_s3 + $0x28] sm:$0xff]  ;;  %v295_v51 = vld [vmem:[%s1099_s5 + $0x60] sm:$0xff]  ;;  %v310_v52 = vld [vmem:[%s1099_s5 + $0xd8] sm:$0xff] }
   0xc   :  { %176 = vmatprep.subr.mxu0 %v639_v9  ;;  %528 = vmatprep.subr.mxu1 %v313_v43  ;;  %v131_v53 = vld [vmem:[%s1098_s3 + $0x20] sm:$0xff]  ;;  %v294_v54 = vld [vmem:[%s1099_s5 + $0x58] sm:$0xff]  ;;  %v309_v55 = vld [vmem:[%s1099_s5 + $0xd0] sm:$0xff] }
   0xd   :  { %177 = vmatpush1.msra.mxu0 %v139_v34  ;;  %529 = vmatpush3.msra.mxu1 %v297_v45  ;;  %v130_v56 = vld [vmem:[%s1098_s3 + $0x18] sm:$0xff]  ;;  %v129_v57 = vld [vmem:[%s1098_s3 + $0x10] sm:$0xff]  ;;  %v128_v58 = vld [vmem:[%s1098_s3 + $0x8] sm:$0xff] }
   0xe   :  { %66 = vperm.xlu1 %632, %v29_v32   ;;  %94 = vperm.xlu0 %631, %v32_v33   ;;  %v127_v59 = vld [vmem:[%s1098_s3] sm:$0xff]  ;;  %v150_v60 = vld [vmem:[%s1098_s3 + $0xb8] sm:$0xff]  ;;  %v149_v61 = vld [vmem:[%s1098_s3 + $0xb0] sm:$0xff] }
   0xf   :  { %178 = vmatprep.subr.mxu0 %v639_v9  ;;  %530 = vmatprep.subr.mxu1 %v312_v46  ;;  %v148_v62 = vld [vmem:[%s1098_s3 + $0xa8] sm:$0xff]  ;;  %v147_v63 = vld [vmem:[%s1098_s3 + $0xa0] sm:$0xff]  ;;  %v146_v0 = vld [vmem:[%s1098_s3 + $0x98] sm:$0xff] }
  0x10   :  { %179 = vmatpush1.msra.mxu0 %v138_v36  ;;  %531 = vmatpush3.msra.mxu1 %v296_v48  ;;  %v145_v1 = vld [vmem:[%s1098_s3 + $0x90] sm:$0xff]  ;;  %v144_v2 = vld [vmem:[%s1098_s3 + $0x88] sm:$0xff]  ;;  %v143_v3 = vld [vmem:[%s1098_s3 + $0x80] sm:$0xff] }
  0x11   :  { %180 = vmatprep.subr.mxu0 %v639_v9  ;;  %532 = vmatprep.subr.mxu1 %v311_v49  ;;  %v308_v32 = vld [vmem:[%s1099_s5 + $0xc8] sm:$0xff]  ;;  %v291_v34 = vld [vmem:[%s1099_s5 + $0x40] sm:$0xff]  ;;  %v290_v36 = vld [vmem:[%s1099_s5 + $0x38] sm:$0xff] }
  0x12   :  { %99 = vperm.xlu0 %631, %v33_v37   ;;  %114 = vrot.lane.b32.xlu1 %v36_v11, %s640_s24  ;;  %v292_v33 = vld [vmem:[%s1099_s5 + $0x48] sm:$0xff]  ;;  %v305_v37 = vld [vmem:[%s1099_s5 + $0xb0] sm:$0xff]  ;;  %v303_v41 = vld [vmem:[%s1099_s5 + $0xa0] sm:$0xff] }
  0x13   :  { %181 = vmatpush1.msra.mxu0 %v137_v38  ;;  %533 = vmatpush3.msra.mxu1 %v295_v51  ;;  %v289_v38 = vld [vmem:[%s1099_s5 + $0x30] sm:$0xff]  ;;  %v287_v42 = vld [vmem:[%s1099_s5 + $0x20] sm:$0xff]  ;;  %v302_v43 = vld [vmem:[%s1099_s5 + $0x98] sm:$0xff] }
  0x14   :  { %182 = vmatprep.subr.mxu0 %v639_v9  ;;  %534 = vmatprep.subr.mxu1 %v310_v52  ;;  %v301_v45 = vld [vmem:[%s1099_s5 + $0x90] sm:$0xff]  ;;  %v284_v48 = vld [vmem:[%s1099_s5 + $0x8] sm:$0xff]  ;;  %v299_v49 = vld [vmem:[%s1099_s5 + $0x80] sm:$0xff] }
  0x15   :  { %183 = vmatpush1.msra.mxu0 %v136_v39  ;;  %535 = vmatpush3.msra.mxu1 %v294_v54  ;;  %v304_v39 = vld [vmem:[%s1099_s5 + $0xa8] sm:$0xff]  ;;  %v285_v46 = vld [vmem:[%s1099_s5 + $0x10] sm:$0xff]  ;;  %v330_v51 = vld [vmem:[%s1099_s5 + $0x178] sm:$0xff] }
  0x16   :  { %116 = vrot.lane.b32.xlu0 %v37_v12, %s640_s24  ;;  %184 = vmatprep.subr.mxu0 %v639_v9  ;;  %v520_v52 = vld [vmem:[%s1100_s4] ss:$0 sm:$0xff] }
  0x17   :  { %185 = vmatpush1.msra.mxu0 %v135_v40  ;;  %536 = vmatprep.subr.mxu1 %v309_v55  ;;  %v288_v40 = vld [vmem:[%s1099_s5 + $0x28] sm:$0xff]  ;;  %v525_v5 = vld [vmem:[%s1101_s6] ss:$0 sm:$0xff] }
  0x18   :  { %186 = vmatprep.subr.mxu0 %v639_v9 }
  0x19   :  { %187 = vmatpush1.msra.mxu0 %v134_v44  ;;  %v286_v44 = vld [vmem:[%s1099_s5 + $0x18] sm:$0xff] }
  0x1a   :  { %188 = vmatprep.subr.mxu0 %v639_v9 }
  0x1b   :  { %189 = vmatpush1.msra.mxu0 %v133_v47  ;;  %v300_v47 = vld [vmem:[%s1099_s5 + $0x88] sm:$0xff] }
  0x1c   :  { %190 = vmatprep.subr.mxu0 %v639_v9 }
  0x1d   :  { %191 = vmatpush1.msra.mxu0 %v132_v50  ;;  %v283_v50 = vld [vmem:[%s1099_s5] sm:$0xff] }
  0x1e   :  { %192 = vmatprep.subr.mxu0 %v639_v9 }
  0x1f   :  { %193 = vmatpush1.msra.mxu0 %v131_v53 }
  0x20   :  { %194 = vmatprep.subr.mxu0 %v639_v9 }
  0x21   :  { %195 = vmatpush1.msra.mxu0 %v130_v56 }
  0x22   :  { %196 = vmatprep.subr.mxu0 %v639_v9 }
  0x23   :  { %197 = vmatpush1.msra.mxu0 %v129_v57 }
  0x24   :  { %198 = vmatprep.subr.mxu0 %v639_v9 }
  0x25   :  { %199 = vmatpush1.msra.mxu0 %v128_v58 }
  0x26   :  { %200 = vmatprep.subr.mxu0 %v639_v9 }
  0x27   :  { %201 = vmatpush1.msra.mxu0 %v127_v59 }
  0x28   :  { %218 = vmatprep.subr.mxu0 %v639_v9 }
  0x29   :  { %219 = vmatpush2.msra.mxu0 %v150_v60 }
  0x2a   :  { %220 = vmatprep.subr.mxu0 %v639_v9 }
  0x2b   :  { %221 = vmatpush2.msra.mxu0 %v149_v61 }
  0x2c   :  { %222 = vmatprep.subr.mxu0 %v639_v9 }
  0x2d   :  { %223 = vmatpush2.msra.mxu0 %v148_v62 }
  0x2e   :  { %224 = vmatprep.subr.mxu0 %v639_v9 }
  0x2f   :  { %225 = vmatpush2.msra.mxu0 %v147_v63 }
  0x30   :  { %226 = vmatprep.subr.mxu0 %v639_v9 }
  0x31   :  { %227 = vmatpush2.msra.mxu0 %v146_v0 }
  0x32   :  { %228 = vmatprep.subr.mxu0 %v639_v9 }
  0x33   :  { %229 = vmatpush2.msra.mxu0 %v145_v1 }
  0x34   :  { %230 = vmatprep.subr.mxu0 %v639_v9 }
  0x35   :  { %231 = vmatpush2.msra.mxu0 %v144_v2 }
  0x36   :  { %232 = vmatprep.subr.mxu0 %v639_v9 }
  0x37   :  { %233 = vmatpush2.msra.mxu0 %v143_v3 }
  0x7d   :  { %v882_v4 = vpop.permute.xlu1 %56  ;;  %v884_v6 = vpop.permute.xlu0 %51 }
  0x7e   :  { %v69_v9 = vmul.f32 %v884_v6, %v725_v25  ;;  %v70_v19 = vmul.f32 %v882_v4, %v718_v22 }
  0x81   :  { %v886_v7 = vpop.permute.xlu1 %89  ;;  %v888_v8 = vpop.permute.xlu0 %84 }
  0x82   :  { %v102_v10 = vmul.f32 %v888_v8, %v738_v28  ;;  %v103_v14 = vmul.f32 %v886_v7, %v734_v27 }
  0x84   :  { %521 = vmatprep.mubr.msk.f32.mxu0 %vm122_vm2, %v102_v10 }
  0x85   :  { %v893_v11 = vpop.permute.xlu1 %61  ;;  %v635_v12 = vpop.permute.xlu0 %634 }
  0x86   :  { %v636_v13 = vunpack.i.l.bf16 %v635_v12  ;;  %v637_v15 = vunpack.i.h.bf16 %v635_v12  ;;  %v71_v25 = vmul.f32 %v893_v11, %v729_v26  ;;  %v293_v26 = vld [vmem:[%s1099_s5 + $0x50] sm:$0xff] }
  0x87   :  { %537 = vmatpush3.msra.mxu1 %v293_v26 }
  0x88   :  { %v123_v16 = vsel %vm122_vm2, %v69_v9, %v636_v13  ;;  %v124_v21 = vsel %vm122_vm2, %v70_v19, %v637_v15  ;;  %538 = vmatprep.subr.mxu1 %v308_v32  ;;  %v329_v19 = vld [vmem:[%s1099_s5 + $0x170] sm:$0xff] }
  0x89   :  { %v900_v17 = vpop.permute.xlu1 %66  ;;  %v902_v18 = vpop.permute.xlu0 %94  ;;  %235 = vmatmul.mubr.f32.vlgmr.msra.gmra.mxu0 %v123_v16  ;;  %539 = vmatpush3.msra.mxu1 %v292_v33  ;;  %v323_v33 = vld [vmem:[%s1099_s5 + $0x140] sm:$0xff] }
  0x8a   :  { %522 = vmatprep.mubr.msk.f32.mxu0 %vm122_vm2, %v103_v14  ;;  %v104_v20 = vmul.f32 %v902_v18, %v749_v31  ;;  %v72_v29 = vmul.f32 %v900_v17, %v745_v30  ;;  %v307_v30 = vld [vmem:[%s1099_s5 + $0xc0] sm:$0xff] }
  0x8b   :  { %540 = vmatprep.subr.mxu1 %v307_v30 }
  0x8c   :  { %541 = vmatpush3.msra.mxu1 %v291_v34  ;;  %v322_v34 = vld [vmem:[%s1099_s5 + $0x138] sm:$0xff] }
  0x8d   :  { %v115_v23 = vpop.permute.xlu1 %114  ;;  %v910_v24 = vpop.permute.xlu0 %99  ;;  %240 = vmatmul.mubr.f32.gmra.mxu0 %v124_v21  ;;  %v328_v21 = vld [vmem:[%s1099_s5 + $0x168] sm:$0xff] }
  0x8e   :  { %523 = vmatprep.mubr.msk.f32.mxu0 %vm122_vm2, %v104_v20  ;;  %v105_v27 = vmul.f32 %v910_v24, %v764_v35  ;;  %v125_v22 = vsel %vm122_vm2, %v71_v25, %v115_v23  ;;  %v306_v35 = vld [vmem:[%s1099_s5 + $0xb8] sm:$0xff]  ;;  %v327_v23 = vld [vmem:[%s1099_s5 + $0x160] sm:$0xff] }
  0x8f   :  { %542 = vmatprep.subr.mxu1 %v306_v35  ;;  %v319_v35 = vld [vmem:[%s1099_s5 + $0x120] sm:$0xff] }
  0x90   :  { %543 = vmatpush3.msra.mxu1 %v290_v36  ;;  %v318_v36 = vld [vmem:[%s1099_s5 + $0x118] sm:$0xff] }
  0x91   :  { %v117_v28 = vpop.permute.xlu0 %116  ;;  %245 = vmatmul.mubr.f32.gmra.mxu0 %v125_v22  ;;  %544 = vmatprep.subr.mxu1 %v305_v37  ;;  %v326_v22 = vld [vmem:[%s1099_s5 + $0x158] sm:$0xff] }
  0x92   :  { %524 = vmatprep.mubr.msk.f32.mxu0 %vm122_vm2, %v105_v27  ;;  %v126_v31 = vsel %vm122_vm2, %v72_v29, %v117_v28  ;;  %545 = vmatpush3.msra.mxu1 %v289_v38  ;;  %v325_v29 = vld [vmem:[%s1099_s5 + $0x150] sm:$0xff] }
  0x93   :  { %546 = vmatprep.subr.mxu1 %v304_v39  ;;  %v317_v38 = vld [vmem:[%s1099_s5 + $0x110] sm:$0xff] }
  0x94   :  { %547 = vmatpush3.msra.mxu1 %v288_v40  ;;  %v316_v40 = vld [vmem:[%s1099_s5 + $0x108] sm:$0xff] }
  0x95   :  { %250 = vmatmul.mubr.f32.gmra.mxu0 %v126_v31  ;;  %548 = vmatprep.subr.mxu1 %v303_v41 }
  0x96   :  { %549 = vmatpush3.msra.mxu1 %v287_v42  ;;  %v315_v42 = vld [vmem:[%s1099_s5 + $0x100] sm:$0xff] }
  0x97   :  { %550 = vmatprep.subr.mxu1 %v302_v43 }
  0x98   :  { %551 = vmatpush3.msra.mxu1 %v286_v44 }
  0x99   :  { %552 = vmatprep.subr.mxu1 %v301_v45 }
  0x9a   :  { %553 = vmatpush3.msra.mxu1 %v285_v46 }
  0x9b   :  { %554 = vmatprep.subr.mxu1 %v300_v47 }
  0x9c   :  { %555 = vmatpush3.msra.mxu1 %v284_v48 }
  0x9d   :  { %556 = vmatprep.subr.mxu1 %v299_v49 }
  0x9e   :  { %557 = vmatpush3.msra.mxu1 %v283_v50 }
  0x9f   :  { %590 = vmatprep.subr.mxu1 %v330_v51 }
 0x149   :  { %v236_v53 = vpop.f32.mrf.mxu0 }
 0x14a   :  { %v237_v54 = vadd.f32 %v520_v52, %v236_v53 }
 0x14b   :  { %v238_v55 = vpop.f32.mrf.mxu0 }
 0x14c   :  { %v991_v56 = vmax.f32 %v237_v54, 0.0 }
 0x14d   :  { %v241_v57 = vpop.f32.mrf.mxu0 }
 0x14e   :  { %402 = vmatprep.mubr.f32.mxu1 %v991_v56  ;;  %v242_v60 = vadd.f32 %v520_v52, %v241_v57  ;;  %v259_v10 = vrot.slane %v991_v56, 7 }
 0x14f   :  { %v243_v58 = vpop.f32.mrf.mxu0 }
 0x150   :  { %v994_v63 = vmax.f32 %v242_v60, 0.0 }
 0x151   :  { %v246_v59 = vpop.f32.mrf.mxu0 }
 0x152   :  { %v247_v0 = vadd.f32 %v520_v52, %v246_v59  ;;  %v260_v12 = vrot.slane %v994_v63, 7  ;;  %v272_v27 = vrot.slane %v994_v63, 1 }
 0x153   :  { %v248_v61 = vpop.f32.mrf.mxu0 }
 0x154   :  { %v1000_v9 = vmax.f32 %v247_v0, 0.0  ;;  %v265_v20 = vsel %vm44_vm0, %v259_v10, %v260_v12 }
 0x155   :  { %v251_v62 = vpop.f32.mrf.mxu0 }
 0x156   :  { %v252_v1 = vadd.f32 %v520_v52, %v251_v62  ;;  %v261_v16 = vrot.slane %v1000_v9, 7  ;;  %v273_v37 = vrot.slane %v1000_v9, 1 }
 0x157   :  { %v253_v2 = vpop.f32.mrf.mxu0 }
 0x158   :  { %v996_v3 = vmax.f32 %v252_v1, 0.0  ;;  %v264_v25 = vsel %vm44_vm0, %v260_v12, %v261_v16  ;;  %v276_v41 = vsel %vm77_vm1, %v272_v27, %v273_v37 }
 0x159   :  { %v269_v28 = vmul.f32 %v264_v25, %v893_v11  ;;  %v324_v11 = vld [vmem:[%s1099_s5 + $0x148] sm:$0xff]  ;;  %v280_v44 = vmul.f32 %v276_v41, %v886_v7 }
 0x15a   :  { %v262_v13 = vrot.slane %v996_v3, 7  ;;  %v274_v39 = vrot.slane %v996_v3, 1 }
 0x15c   :  { %v266_v14 = vsel %vm44_vm0, %v262_v13, %v259_v10  ;;  %v263_v31 = vsel %vm44_vm0, %v261_v16, %v262_v13  ;;  %v275_v43 = vsel %vm77_vm1, %v273_v37, %v274_v39 }
 0x15d   :  { %v267_v15 = vmul.f32 %v266_v14, %v884_v6  ;;  %v268_v6 = vmul.f32 %v265_v20, %v882_v4  ;;  %v271_v4 = vrot.slane %v991_v56, 1  ;;  %v270_v32 = vmul.f32 %v263_v31, %v900_v17  ;;  %v321_v17 = vld [vmem:[%s1099_s5 + $0x130] sm:$0xff] }
 0x15e   :  { %v281_v45 = vmul.f32 %v275_v43, %v902_v18 }
 0x15f   :  { %403 = vmatmul.mubr.f32.vlgmr.msra.gmra.mxu1 %v267_v15  ;;  %v277_v26 = vsel %vm77_vm1, %v271_v4, %v272_v27  ;;  %v278_v46 = vsel %vm77_vm1, %v274_v39, %v271_v4 }
 0x160   :  { %591 = vmatpush3.msra.mxu1 %v330_v51  ;;  %407 = vmatprep.mubr.f32.mxu1 %v994_v63  ;;  %v279_v30 = vmul.f32 %v277_v26, %v888_v8  ;;  %v320_v8 = vld [vmem:[%s1099_s5 + $0x128] sm:$0xff]  ;;  %v282_v47 = vmul.f32 %v278_v46, %v910_v24 }
 0x161   :  { %592 = vmatprep.subr.mxu1 %v329_v19 }
 0x162   :  { %593 = vmatpush3.msra.mxu1 %v329_v19 }
 0x163   :  { %594 = vmatprep.subr.mxu1 %v328_v21  ;;  %408 = vmatmul.mubr.f32.gmra.mxu1 %v268_v6 }
 0x164   :  { %595 = vmatpush3.msra.mxu1 %v328_v21  ;;  %412 = vmatprep.mubr.f32.mxu1 %v1000_v9 }
 0x165   :  { %596 = vmatprep.subr.mxu1 %v327_v23 }
 0x166   :  { %597 = vmatpush3.msra.mxu1 %v327_v23 }
 0x167   :  { %598 = vmatprep.subr.mxu1 %v326_v22  ;;  %413 = vmatmul.mubr.f32.gmra.mxu1 %v269_v28 }
 0x168   :  { %599 = vmatpush3.msra.mxu1 %v326_v22  ;;  %417 = vmatprep.mubr.f32.mxu1 %v996_v3 }
 0x169   :  { %600 = vmatprep.subr.mxu1 %v325_v29 }
 0x16a   :  { %601 = vmatpush3.msra.mxu1 %v325_v29 }
 0x16b   :  { %602 = vmatprep.subr.mxu1 %v324_v11  ;;  %418 = vmatmul.mubr.f32.gmra.mxu1 %v270_v32 }
 0x16c   :  { %603 = vmatpush3.msra.mxu1 %v324_v11  ;;  %622 = vmatprep.mubr.f32.mxu1 %v279_v30 }
 0x16d   :  { %604 = vmatprep.subr.mxu1 %v323_v33 }
 0x16e   :  { %605 = vmatpush3.msra.mxu1 %v323_v33 }
 0x16f   :  { %606 = vmatprep.subr.mxu1 %v322_v34 }
 0x170   :  { %607 = vmatpush3.msra.mxu1 %v322_v34 }
 0x171   :  { %608 = vmatprep.subr.mxu1 %v321_v17 }
 0x172   :  { %609 = vmatpush3.msra.mxu1 %v321_v17 }
 0x173   :  { %610 = vmatprep.subr.mxu1 %v320_v8 }
 0x174   :  { %611 = vmatpush3.msra.mxu1 %v320_v8 }
 0x175   :  { %612 = vmatprep.subr.mxu1 %v319_v35 }
 0x176   :  { %613 = vmatpush3.msra.mxu1 %v319_v35 }
 0x177   :  { %614 = vmatprep.subr.mxu1 %v318_v36 }
 0x178   :  { %615 = vmatpush3.msra.mxu1 %v318_v36 }
 0x179   :  { %616 = vmatprep.subr.mxu1 %v317_v38 }
 0x17a   :  { %617 = vmatpush3.msra.mxu1 %v317_v38 }
 0x17b   :  { %618 = vmatprep.subr.mxu1 %v316_v40 }
 0x17c   :  { %619 = vmatpush3.msra.mxu1 %v316_v40 }
 0x17d   :  { %620 = vmatprep.subr.mxu1 %v315_v42 }
 0x17e   :  { %621 = vmatpush3.msra.mxu1 %v315_v42 }
 0x17f   :  { %623 = vmatmul.mubr.f32.vlgmr.msra.gmra.mxu1 %v280_v44 }
 0x180   :  { %625 = vmatprep.mubr.f32.mxu1 %v281_v45 }
 0x183   :  { %626 = vmatmul.mubr.f32.gmra.mxu1 %v282_v47 }
 0x21f   :  { %v558_v48 = vpop.f32.mrf.mxu1 }
 0x221   :  { %v559_v49 = vpop.f32.mrf.mxu1 }
 0x222   :  { %v560_v56 = vadd.f32 %v559_v49, %v558_v48 }
 0x223   :  { %v561_v50 = vpop.f32.mrf.mxu1 }
 0x224   :  { %v405_v60 = vadd.f32 %v560_v56, %v525_v5 }
 0x225   :  { %v562_v51 = vpop.f32.mrf.mxu1 }
 0x226   :  { %v563_v7 = vadd.f32 %v562_v51, %v561_v50 }
 0x227   :  { %v564_v52 = vpop.f32.mrf.mxu1 }
 0x228   :  { %v410_v57 = vadd.f32 %v563_v7, %v525_v5 }
 0x229   :  { %v565_v53 = vpop.f32.mrf.mxu1 }
 0x22a   :  { %v566_v59 = vadd.f32 %v565_v53, %v564_v52 }
 0x22b   :  { %v567_v54 = vpop.f32.mrf.mxu1 }
 0x22c   :  { %v415_v10 = vadd.f32 %v566_v59, %v525_v5 }
 0x22d   :  { %v568_v55 = vpop.f32.mrf.mxu1 }
 0x22e   :  { %v569_v18 = vadd.f32 %v568_v55, %v567_v54 }
 0x230   :  { %v420_v0 = vadd.f32 %v569_v18, %v525_v5 }
 0x23f   :  { %v624_v58 = vpop.f32.mrf.mxu1 }
 0x240   :  { %v495_v24 = vadd.f32 %v624_v58, %v410_v57 }
 0x241   :  { %v489_v61 = vpop.f32.mrf.mxu1 }
 0x242   :  { %v509_v62 = vmax.f32 %v495_v24, 0.0  ;;  %v490_v63 = vadd.f32 %v489_v61, %v405_v60 }
 0x243   :  { %v627_v1 = vpop.f32.mrf.mxu1 }
 0x244   :  { %513 = vst [vmem:[%s1102_s7 + $0x8] sm:$0xff] %v509_v62  ;;  %v508_v2 = vmax.f32 %v490_v63, 0.0  ;;  %v505_v3 = vadd.f32 %v627_v1, %v420_v0 }
 0x245   :  { %v499_v12 = vpop.f32.mrf.mxu1 }
 0x246   :  { %512 = vst [vmem:[%s1102_s7] sm:$0xff] %v508_v2  ;;  %v511_v9 = vmax.f32 %v505_v3, 0.0  ;;  %v500_v13 = vadd.f32 %v499_v12, %v415_v10 }
 0x248   :  { %515 = vst [vmem:[%s1102_s7 + $0x18] sm:$0xff] %v511_v9  ;;  %v510_v14 = vmax.f32 %v500_v13, 0.0 }
 0x24a   :  { %514 = vst [vmem:[%s1102_s7 + $0x10] sm:$0xff] %v510_v14 }

</bundles_post_ra>
